<compile_context>
chip_gen: v5e
topology: v5e:2x2
jax: 0.10.0
libtpu: 0.0.40
codegen_flags: <defaults>
</compile_context>

<pallas_src>
from functools import partial

import jax
import jax.numpy as jnp
from jax.experimental import pallas as pl
from jax.experimental.pallas import tpu as pltpu

NEG_SLOPE = 0.01       # nn.LeakyReLU default negative_slope
LOG_STD_MIN = -2.0     # module: self.log_std_min = -2
LOG_STD_MAX = 20.0     # module: self.log_std_max = 20 (verified against the spec)
LANE = 128             # TPU lane width; heads / output padded lane-dense
TILE_B = 512           # batch tile when gridding over large B


def _round_up(x, m):
    return (x + m - 1) // m * m


def _actor_kernel(deterministic, *refs):
    """Fused 2-layer MLP + fused (mu|log_std) head + sampling, all in VMEM.

    refs (stochastic):    state, net_packed, head_packed, eps, out
    refs (deterministic): state, net_packed, head_packed, out
    """
    if deterministic:
        state_ref, net_ref, head_ref, out_ref = refs
        eps_ref = None
    else:
        state_ref, net_ref, head_ref, eps_ref, out_ref = refs

    D = state_ref.shape[1]
    H = net_ref.shape[1]

    x = state_ref[...]                                   # (tB, D)

    # ---- net: Linear(D,H) -> LeakyReLU -> Linear(H,H) (last layer: no act) ----
    w1 = net_ref[0:D, :]                                 # (D, H)
    w2 = net_ref[D:D + H, :]                             # (H, H)
    b1 = net_ref[D + H:D + H + 1, :]                     # (1, H)
    b2 = net_ref[D + H + 1:D + H + 2, :]                 # (1, H)

    h = jnp.dot(x, w1, preferred_element_type=jnp.float32) + b1
    h = jnp.where(h >= 0.0, h, NEG_SLOPE * h)            # LeakyReLU (VPU)
    h = jnp.dot(h, w2, preferred_element_type=jnp.float32) + b2

    # ---- fused heads: one (H, 2*LANE) matmul.
    #      mu weights in lanes [0,128), log_std weights in lanes [128,256);
    #      unused lanes are zero-padded, act_scaling is zero past action_dim. ----
    w_heads = head_ref[0:H, :]                           # (H, 2*LANE)
    b_heads = head_ref[H:H + 1, :]                       # (1, 2*LANE)
    scale = head_ref[H + 1:H + 2, 0:LANE]                # (1, LANE)

    heads = jnp.dot(h, w_heads, preferred_element_type=jnp.float32) + b_heads
    mu = jnp.tanh(heads[:, 0:LANE])                      # (tB, LANE), lane-aligned

    if deterministic:
        out_ref[...] = scale * mu
    else:
        log_std = jnp.clip(heads[:, LANE:2 * LANE], LOG_STD_MIN, LOG_STD_MAX)
        std = jnp.exp(log_std)                           # EUP
        action = mu + std * eps_ref[...]
        # padded lanes: scale == 0 -> output 0 there (sliced off in wrapper)
        out_ref[...] = jnp.clip(scale * action, -scale, scale)


def pack_params(params, act_scaling_vec):
    """Pack 8 weight/bias tensors + act_scaling into two DMA-friendly blobs.

    Do this ONCE at init (outside the hot path).
      net blob : rows [0,D)=w1, [D,D+H)=w2, row D+H=b1, row D+H+1=b2
      head blob: rows [0,H)=w_heads (mu lanes [0,A), log_std lanes [128,128+A)),
                 row H=b_heads, row H+1=act_scaling (lanes [0,A)), rest zero.
    """
    w1, b1, w2, b2 = params["w1"], params["b1"], params["w2"], params["b2"]
    wmu, bmu, wls, bls = params["wmu"], params["bmu"], params["wls"], params["bls"]
    D, H = w1.shape
    A = wmu.shape[1]
    assert A <= LANE

    net_rows = _round_up(D + H + 2, 8)
    net = jnp.zeros((net_rows, H), jnp.float32)
    net = net.at[0:D, :].set(w1)
    net = net.at[D:D + H, :].set(w2)
    net = net.at[D + H, :].set(b1.reshape(H))
    net = net.at[D + H + 1, :].set(b2.reshape(H))

    head_rows = _round_up(H + 2, 8)
    head = jnp.zeros((head_rows, 2 * LANE), jnp.float32)
    head = head.at[0:H, 0:A].set(wmu)
    head = head.at[0:H, LANE:LANE + A].set(wls)
    head = head.at[H, 0:A].set(bmu.reshape(A))
    head = head.at[H, LANE:LANE + A].set(bls.reshape(A))
    head = head.at[H + 1, 0:A].set(act_scaling_vec.reshape(A))
    return net, head


def gaussian_actor_forward(state, net_packed, head_packed, *, action_dim,
                           eps=None, deterministic=False):
    """state: (B, D) f32; eps: (B, action_dim) f32 (ignored when deterministic).
    Returns pi_action: (B, action_dim) f32."""
    B, D = state.shape
    H = net_packed.shape[1]
    A = action_dim

    operands = [state, net_packed, head_packed]
    if not deterministic:
        assert eps is not None and eps.shape == (B, A)
        # lane-dense eps; only the first A lanes matter (padded lanes hit scale==0)
        operands.append(jnp.pad(eps, ((0, 0), (0, LANE - A))))

    kernel = partial(_actor_kernel, deterministic)
    out_shape = jax.ShapeDtypeStruct((B, LANE), jnp.float32)

    use_grid = (B % TILE_B == 0) and (B > TILE_B)
    if use_grid:
        net_rows = net_packed.shape[0]
        head_rows = head_packed.shape[0]
        in_specs = [
            pl.BlockSpec((TILE_B, D), lambda i: (i, 0)),
            pl.BlockSpec((net_rows, H), lambda i: (0, 0)),        # weights broadcast
            pl.BlockSpec((head_rows, 2 * LANE), lambda i: (0, 0)),
        ]
        if not deterministic:
            in_specs.append(pl.BlockSpec((TILE_B, LANE), lambda i: (i, 0)))
        out = pl.pallas_call(
            kernel,
            out_shape=out_shape,
            grid=(B // TILE_B,),
            in_specs=in_specs,
            out_specs=pl.BlockSpec((TILE_B, LANE), lambda i: (i, 0)),
            compiler_params=pltpu.CompilerParams(
                dimension_semantics=("parallel",)),   # shards B over v7x's 2 TCs
        )(*operands)
    else:
        # Small batch: no grid, 4 full-array VMEM blocks (was 11 operands/DMAs).
        out = pl.pallas_call(
            kernel,
            out_shape=out_shape,
            in_specs=[pl.BlockSpec(memory_space=pltpu.VMEM)] * len(operands),
            out_specs=pl.BlockSpec(memory_space=pltpu.VMEM),
        )(*operands)

    return out[:, :A]


def _init_linear(key, fan_in, fan_out):
    """Deterministic stand-in for PyTorch's default Linear init: U(-1/sqrt(fan_in), +)."""
    kw, kb = jax.random.split(key)
    bound = 1.0 / jnp.sqrt(float(fan_in))
    w = jax.random.uniform(kw, (fan_in, fan_out), jnp.float32, -bound, bound)
    b = jax.random.uniform(kb, (1, fan_out), jnp.float32, -bound, bound)
    return w, b


if __name__ == "__main__":
    config = dict(obs_dim=16, hidden_dims_actor=32, num_hidden_layers_actor=2,
                  action_dim=4, act_scaling=2.0)
    B = 8
    D, H, A = config["obs_dim"], config["hidden_dims_actor"], config["action_dim"]

    root = jax.random.PRNGKey(0)
    k_state, k_eps, k1, k2, k3, k4 = jax.random.split(root, 6)

    w1, b1 = _init_linear(k1, D, H)     # net layer 0 (+ LeakyReLU)
    w2, b2 = _init_linear(k2, H, H)     # net layer 1 (torchvision MLP: no act)
    wmu, bmu = _init_linear(k3, H, A)   # mu head (+ Tanh)
    wls, bls = _init_linear(k4, H, A)   # log_std head
    params = dict(w1=w1, b1=b1, w2=w2, b2=b2, wmu=wmu, bmu=bmu, wls=wls, bls=bls)
    act_scaling = jnp.full((1, A), config["act_scaling"], dtype=jnp.float32)

    net_packed, head_packed = pack_params(params, act_scaling)

    state = jax.random.normal(k_state, (B, D), dtype=jnp.float32)
    eps = jax.random.normal(k_eps, (B, A), dtype=jnp.float32)   # randn_like(std)

    # stochastic path
    pi = gaussian_actor_forward(state, net_packed, head_packed, action_dim=A,
                                eps=eps, deterministic=False)
    jax.block_until_ready(pi)

    # deterministic path (eps operand dropped -> 3 DMAs)
    pi_det = gaussian_actor_forward(state, net_packed, head_packed, action_dim=A,
                                    deterministic=True)
    jax.block_until_ready(pi_det)

    # pure-JAX reference (high-precision matmuls) to validate packing/fusion
    def ref_forward(s, e, deterministic):
        hp = jax.lax.Precision.HIGHEST
        h = jnp.dot(s, params["w1"], precision=hp) + params["b1"]
        h = jnp.where(h >= 0.0, h, NEG_SLOPE * h)
        h = jnp.dot(h, params["w2"], precision=hp) + params["b2"]
        mu = jnp.tanh(jnp.dot(h, params["wmu"], precision=hp) + params["bmu"])
        if deterministic:
            return act_scaling * mu
        log_std = jnp.clip(jnp.dot(h, params["wls"], precision=hp) + params["bls"],
                           LOG_STD_MIN, LOG_STD_MAX)
        std = jnp.exp(log_std)
        action = mu + std * e
        return jnp.clip(act_scaling * action, -act_scaling, act_scaling)

    assert pi.shape == (B, A) and pi_det.shape == (B, A)
    assert bool(jnp.all(jnp.abs(pi) <= config["act_scaling"] + 1e-6))
    assert jnp.allclose(pi, ref_forward(state, eps, False), atol=1e-3, rtol=1e-3)
    assert jnp.allclose(pi_det, ref_forward(state, None, True), atol=1e-3, rtol=1e-3)

    # exercise the large-batch gridded path (TILE_B blocks, parallel batch axis)
    B2 = 2 * TILE_B
    k_s2, k_e2 = jax.random.split(jax.random.PRNGKey(1))
    state2 = jax.random.normal(k_s2, (B2, D), dtype=jnp.float32)
    eps2 = jax.random.normal(k_e2, (B2, A), dtype=jnp.float32)
    pi2 = gaussian_actor_forward(state2, net_packed, head_packed, action_dim=A,
                                 eps=eps2, deterministic=False)
    jax.block_until_ready(pi2)
    assert pi2.shape == (B2, A)
    assert jnp.allclose(pi2, ref_forward(state2, eps2, False), atol=1e-3, rtol=1e-3)

    print("KERNEL_OK")
</pallas_src>

<mosaic_0001>
module attributes {stable_mosaic.version = 11 : i64} {
  func.func @_actor_kernel(%arg0: memref<8x16xf32, #tpu.memory_space<vmem>>, %arg1: memref<56x32xf32, #tpu.memory_space<vmem>>, %arg2: memref<40x256xf32, #tpu.memory_space<vmem>>, %arg3: memref<8x128xf32, #tpu.memory_space<vmem>>, %arg4: memref<8x128xf32, #tpu.memory_space<vmem>>) attributes {dimension_semantics = [], scalar_prefetch = 0 : i64, scratch_operands = 0 : i64, tpu.core_type = #tpu.core_type<tc>} {
    %c0 = arith.constant 0 : index
    %c0_0 = arith.constant 0 : index
    %0 = vector.load %arg0[%c0, %c0_0] : memref<8x16xf32, #tpu.memory_space<vmem>>, vector<8x16xf32>
    %c0_1 = arith.constant 0 : index
    %c0_2 = arith.constant 0 : index
    %1 = vector.load %arg1[%c0_1, %c0_2] : memref<56x32xf32, #tpu.memory_space<vmem>>, vector<16x32xf32>
    %c16 = arith.constant 16 : index
    %c0_3 = arith.constant 0 : index
    %2 = vector.load %arg1[%c16, %c0_3] : memref<56x32xf32, #tpu.memory_space<vmem>>, vector<32x32xf32>
    %c48 = arith.constant 48 : index
    %c0_4 = arith.constant 0 : index
    %3 = vector.load %arg1[%c48, %c0_4] : memref<56x32xf32, #tpu.memory_space<vmem>>, vector<1x32xf32>
    %c49 = arith.constant 49 : index
    %c0_5 = arith.constant 0 : index
    %4 = vector.load %arg1[%c49, %c0_5] : memref<56x32xf32, #tpu.memory_space<vmem>>, vector<1x32xf32>
    %cst = arith.constant dense<0.000000e+00> : vector<8x32xf32>
    %5 = tpu.matmul %0, %1, %cst {dimension_numbers = #tpu.dot_dimension_numbers<[1], [0], [0], [1], [0, 0, 1, 1], [], []>} : vector<8x16xf32>, vector<16x32xf32>, vector<8x32xf32> -> vector<8x32xf32>
    %6 = vector.broadcast %3 : vector<1x32xf32> to vector<8x32xf32>
    %7 = arith.addf %5, %6 : vector<8x32xf32>
    %cst_6 = arith.constant 0.000000e+00 : f32
    %8 = vector.broadcast %cst_6 : f32 to vector<8x32xf32>
    %9 = arith.cmpf oge, %7, %8 : vector<8x32xf32>
    %cst_7 = arith.constant 0.00999999977 : f32
    %10 = vector.broadcast %cst_7 : f32 to vector<8x32xf32>
    %11 = arith.mulf %10, %7 : vector<8x32xf32>
    %12 = arith.select %9, %7, %11 : vector<8x32xi1>, vector<8x32xf32>
    %cst_8 = arith.constant dense<0.000000e+00> : vector<8x32xf32>
    %13 = tpu.matmul %12, %2, %cst_8 {dimension_numbers = #tpu.dot_dimension_numbers<[1], [0], [0], [1], [0, 0, 1, 1], [], []>} : vector<8x32xf32>, vector<32x32xf32>, vector<8x32xf32> -> vector<8x32xf32>
    %14 = vector.broadcast %4 : vector<1x32xf32> to vector<8x32xf32>
    %15 = arith.addf %13, %14 : vector<8x32xf32>
    %c0_9 = arith.constant 0 : index
    %c0_10 = arith.constant 0 : index
    %16 = vector.load %arg2[%c0_9, %c0_10] : memref<40x256xf32, #tpu.memory_space<vmem>>, vector<32x256xf32>
    %c32 = arith.constant 32 : index
    %c0_11 = arith.constant 0 : index
    %17 = vector.load %arg2[%c32, %c0_11] : memref<40x256xf32, #tpu.memory_space<vmem>>, vector<1x256xf32>
    %c33 = arith.constant 33 : index
    %c0_12 = arith.constant 0 : index
    %18 = vector.load %arg2[%c33, %c0_12] : memref<40x256xf32, #tpu.memory_space<vmem>>, vector<1x128xf32>
    %cst_13 = arith.constant dense<0.000000e+00> : vector<8x256xf32>
    %19 = tpu.matmul %15, %16, %cst_13 {dimension_numbers = #tpu.dot_dimension_numbers<[1], [0], [0], [1], [0, 0, 1, 1], [], []>} : vector<8x32xf32>, vector<32x256xf32>, vector<8x256xf32> -> vector<8x256xf32>
    %20 = vector.broadcast %17 : vector<1x256xf32> to vector<8x256xf32>
    %21 = arith.addf %19, %20 : vector<8x256xf32>
    %22 = vector.extract_strided_slice %21 {offsets = [0, 0], sizes = [8, 128], strides = [1, 1]} : vector<8x256xf32> to vector<8x128xf32>
    %23 = math.tanh %22 : vector<8x128xf32>
    %24 = vector.extract_strided_slice %21 {offsets = [0, 128], sizes = [8, 128], strides = [1, 1]} : vector<8x256xf32> to vector<8x128xf32>
    %cst_14 = arith.constant -2.000000e+00 : f32
    %cst_15 = arith.constant 2.000000e+01 : f32
    %25 = vector.broadcast %cst_14 : f32 to vector<8x128xf32>
    %26 = arith.maximumf %25, %24 : vector<8x128xf32>
    %27 = vector.broadcast %cst_15 : f32 to vector<8x128xf32>
    %28 = arith.minimumf %27, %26 : vector<8x128xf32>
    %29 = math.exp %28 : vector<8x128xf32>
    %c0_16 = arith.constant 0 : index
    %c0_17 = arith.constant 0 : index
    %30 = vector.load %arg3[%c0_16, %c0_17] : memref<8x128xf32, #tpu.memory_space<vmem>>, vector<8x128xf32>
    %31 = arith.mulf %29, %30 : vector<8x128xf32>
    %32 = arith.addf %23, %31 : vector<8x128xf32>
    %33 = vector.broadcast %18 : vector<1x128xf32> to vector<8x128xf32>
    %34 = arith.mulf %33, %32 : vector<8x128xf32>
    %cst_18 = arith.constant 0.000000e+00 : f32
    %35 = vector.broadcast %cst_18 : f32 to vector<1x128xf32>
    %36 = arith.subf %35, %18 : vector<1x128xf32>
    %37 = vector.broadcast %36 : vector<1x128xf32> to vector<8x128xf32>
    %38 = arith.maximumf %37, %34 : vector<8x128xf32>
    %39 = vector.broadcast %18 : vector<1x128xf32> to vector<8x128xf32>
    %40 = arith.minimumf %39, %38 : vector<8x128xf32>
    %c0_19 = arith.constant 0 : index
    %c0_20 = arith.constant 0 : index
    %41 = vector.load %arg4[%c0_19, %c0_20] : memref<8x128xf32, #tpu.memory_space<vmem>>, vector<8x128xf32>
    tpu.vector_store %arg4[%c0_19, %c0_20], %40 {strides = array<i32>} : memref<8x128xf32, #tpu.memory_space<vmem>>, vector<8x128xf32>,
    return
  }
}

</mosaic_0001>

<bundles_post_ra>
// kernel: tpu_custom_call.1
= control target key start
LH: loop header
LB: loop body
LE: loop exit
PB: predicated region body
PF: predicated region fallthrough
CT: control target
= control target key end

     0   :  { %9 = vsyncpa [#allocation3], 0  ;;  %s338_s0 = inlined_call_operand.vmem [shape: f32[8,16], index: 0, kind: input, shape index: {}]   ;;  %s339_s1 = inlined_call_operand.vmem [shape: f32[56,32], index: 1, kind: input, shape index: {}]   ;;  %s340_s2 = inlined_call_operand.vmem [shape: f32[40,256], index: 2, kind: input, shape index: {}]   ;;  %s341_s3 = inlined_call_operand.hbm [shape: f32[8,128], index: 3, kind: input, shape index: {}]   ;;  %s342_s4 = inlined_call_operand.hbm [shape: f32[8,128], index: 4, kind: output, shape index: {}]  }
   0x1   :  { %10 = vsyncpa [#allocation4], 0  ;;  %s22_s17 = sshll.u32 %s341_s3, 4  ;;  %s248_s18 = smov [#allocation2]   ;;  %s23_s17 = int_to_ptr.hbm [resolvable:$true] %s22_s17 }
   0x2   :  { %s24_s19 = sshll.u32 %s248_s18, 4  ;;  %s25_s19 = int_to_ptr.vmem [resolvable:$true] %s24_s19 }
   0x3   :  { %27 = dma.hbm_to_vmem [thread:$0]  %s23_s17, 128, %s25_s19, [#allocation3]  }
   0x4   :  { %244 = dma.done.wait [#allocation3], 128  }
   0x5   :  { %245 = vsyncadd [#allocation3], 4294967168  ;;  %v34_v0 = vld [vmem:[%s339_s1 + $0x8] sm:$0xff]  ;;  %v33_v1 = vld [vmem:[%s339_s1] sm:$0xff]  ;;  %vm42_vm0 = vcmask 130048   ;;  %vm70_vm2 = vcmask 261120  }
   0x6   :  { %60 = vmatpush.msra.mxu0 %v34_v0  ;;  %v32_v2 = vld [vmem:[%s338_s0] sm:$0xff]  ;;  %v38_v3 = vld [vmem:[%s339_s1 + $0x28] sm:$0xff]  ;;  %v36_v5 = vld [vmem:[%s339_s1 + $0x18] sm:$0xff]  ;;  %s249_s28 = smov [#allocation5]   ;;  %s173_s0 = sshll.u32 %s342_s4, 4  ;;  %s174_s0 = int_to_ptr.hbm [resolvable:$true] %s173_s0 }
   0x7   :  { %86 = vmatpush.msra.mxu1 %v38_v3  ;;  %v37_v4 = vld [vmem:[%s339_s1 + $0x20] sm:$0xff]  ;;  %v35_v6 = vld [vmem:[%s339_s1 + $0x10] sm:$0xff]  ;;  %v101_v8 = vld [vmem:[%s340_s2 + $0x38] sm:$0xff]  ;;  %s171_s29 = sshll.u32 %s249_s28, 4  ;;  %s172_s29 = int_to_ptr.vmem [resolvable:$true] %s171_s29 }
   0x8   :  { %61 = vmatpush.msra.mxu0 %v33_v1  ;;  %v100_v7 = vld [vmem:[%s340_s2 + $0x30] sm:$0xff]  ;;  %v98_v9 = vld [vmem:[%s340_s2 + $0x20] sm:$0xff]  ;;  %145 = vmatpush.msra.mxu3 %v101_v8  ;;  %v99_v10 = vld [vmem:[%s340_s2 + $0x28] sm:$0xff] }
   0x9   :  { %183 = vmatmul.msk.f32.vlgmr.msra.gmra.mxu0 %vm42_vm0, %v32_v2  ;;  %87 = vmatpush.msra.mxu1 %v37_v4  ;;  %v190_v11 = vld [vmem:[%s339_s1 + $0x30] ss:$0 sm:$0xff]  ;;  %v97_v17 = vld [vmem:[%s340_s2 + $0x18] sm:$0xff]  ;;  %v94_v18 = vld [vmem:[%s340_s2] sm:$0xff] }
   0xa   :  { %125 = vmatpush.msra.mxu2 %v100_v7  ;;  %146 = vmatpush.msra.mxu3 %v99_v10  ;;  %v96_v16 = vld [vmem:[%s340_s2 + $0x10] sm:$0xff]  ;;  %v95_v19 = vld [vmem:[%s340_s2 + $0x8] sm:$0xff]  ;;  %v158_v33 = vld [vmem:[#allocation2] sm:$0xff] }
   0xb   :  { %88 = vmatpush.msra.mxu1 %v36_v5  ;;  %v191_v20 = vld [vmem:[%s339_s1 + $0x31] ss:$0 sm:$0xff]  ;;  %v185_v23 = vld [vmem:[%s340_s2 + $0x40] ss:$8 sm:$0x3] }
   0xc   :  { %126 = vmatpush.msra.mxu2 %v98_v9  ;;  %147 = vmatpush.msra.mxu3 %v97_v17  ;;  %v107_v24 = vperm.slane %v185_v23, 1  ;;  %v106_v27 = vperm.slane %v185_v23, 0  ;;  %v104_v35 = vld [vmem:[%s340_s2 + $0x41] ss:$0 sm:$0xff] }
   0xd   :  { %89 = vmatpush.msra.mxu1 %v35_v6  ;;  %v162_v39 = vsub.f32 0.0, %v104_v35 }
   0xe   :  { %127 = vmatpush.msra.mxu2 %v96_v16  ;;  %148 = vmatpush.msra.mxu3 %v95_v19 }
  0x10   :  { %128 = vmatpush.msra.mxu2 %v94_v18 }
  0x86   :  { %v63_v12 = vpop.f32.mrf.mxu0 }
  0x87   :  { %v64_v13 = vadd.f32 %v190_v11, %v63_v12 }
  0x89   :  { %v67_v14 = vmul.f32 0.01, %v64_v13  ;;  %vm66_vm1 = vcmp.ge.f32.partialorder %v64_v13, 0.0 }
  0x8b   :  { %v68_v15 = vsel %vm66_vm1, %v64_v13, %v67_v14 }
  0x8c   :  { %184 = vmatmul.msk.f32.vlgmr.msra.gmra.mxu1 %vm70_vm2, %v68_v15 }
 0x109   :  { %v91_v21 = vpop.f32.mrf.mxu1 }
 0x10a   :  { %v92_v22 = vadd.f32 %v191_v20, %v91_v21 }
 0x10c   :  { %186 = vmatmul.msk.f32.vlgmr.msra.gmra.mxu2 %vm70_vm2, %v92_v22  ;;  %187 = vmatmul.msk.f32.vlgmr.msra.gmra.mxu3 %vm70_vm2, %v92_v22 }
 0x18f   :  { %v150_v25 = vpop.f32.mrf.mxu3  ;;  %v130_v29 = vpop.f32.mrf.mxu2 }
 0x190   :  { %v151_v26 = vadd.f32 %v150_v25, %v107_v24  ;;  %v131_v31 = vadd.f32 %v130_v29, %v106_v27 }
 0x192   :  { %v154_v28 = vmax.f32 %v151_v26, -2.0 }
 0x194   :  { %v155_v30 = vmin.f32 %v154_v28, 20.0 }
 0x196   :  { %v156_v32 = vmul.f32 1.442695, %v155_v30 }
 0x198   :  { %192 = vpow2.f32 %v156_v32 }
 0x199   :  { %194 = vtanh.f32 %v131_v31 }
 0x19e   :  { %v193_v34 = vpop.eup %192 }
 0x19f   :  { %v159_v36 = vmul.f32 %v193_v34, %v158_v33  ;;  %v195_v37 = vpop.eup %194 }
 0x1a1   :  { %v160_v38 = vadd.f32 %v195_v37, %v159_v36 }
 0x1a3   :  { %v161_v40 = vmul.f32 %v160_v38, %v104_v35 }
 0x1a5   :  { %v163_v41 = vmax.f32 %v162_v39, %v161_v40 }
 0x1a7   :  { %v164_v42 = vmin.f32 %v104_v35, %v163_v41 }
 0x1a9   :  { %165 = vst [vmem:[#allocation5] sm:$0xff] %v164_v42 }
 0x1aa   :  { %176 = dma.vmem_to_hbm [thread:$0]  %s172_s29, 128, %s174_s0, [#allocation4]  }
 0x1ab   :  { %246 = dma.done.wait [#allocation4], 128  }
 0x1ac   :  { %247 = vsyncadd [#allocation4], 4294967168 }
 0x1ad   :  { %181 = vsyncpa [#allocation3], 1 }
 0x1ae   :  { %182 = vsyncpa [#allocation4], 1 }

</bundles_post_ra>
